<compile_context>
chip_gen: v7x
topology: tpu7x:2x2x1
jax: 0.10.0
libtpu: 0.0.40
codegen_flags: <defaults>
</compile_context>

<pallas_src>
import jax
import jax.numpy as jnp
from jax.experimental import pallas as pl
from jax.experimental.pallas import tpu as pltpu

INV_SQRT2 = 0.7071067811865476  # 1 / sqrt(2)


def _two_head_student_kernel(x_ref, wn_ref, wh_ref, post_ref, pre_ref):
    out = post_ref.shape[-1]
    # Neck matmul on the MXU with f32 accumulation: [TB, in] @ [in, hid].
    # Cast to the (pre-packed) weight dtype so bf16 weights hit the bf16 MXU path.
    h = jnp.dot(x_ref[...].astype(wn_ref.dtype), wn_ref[...],
                preferred_element_type=jnp.float32)
    # ScaledERF in f32 on the EUP/VPU (v5e has no bf16 vector ALUs).
    a = jax.lax.erf(h * INV_SQRT2)
    # Both heads fused into one lane-denser matmul: [TB, hid] @ [hid, 2*out].
    # NOTE: for very large hid, tile hid here (fori_loop: neck chunk -> erf ->
    # accumulate into a VMEM scratch) instead of materializing the full (TB, hid).
    fused = jnp.dot(a.astype(wh_ref.dtype), wh_ref[...],
                    preferred_element_type=jnp.float32)
    # Static halves -> two outputs; avoids a wrapper-side split pass over HBM.
    post_ref[...] = fused[:, :out].astype(post_ref.dtype)
    pre_ref[...] = fused[:, out:].astype(pre_ref.dtype)


def pack_two_head_weights(w_neck, w_head0, w_head1, dtype=None):
    """One-time layout plumbing (do this at parameter-build time, NOT per call):
    pre-transpose / concat the PyTorch-layout weights so the kernel feeds the MXU
    directly with no in-kernel transposes and no per-call repacking.

      w_neck [hid, in]      -> wn_t [in, hid]
      heads  2 x [out, hid] -> wh_t [hid, 2*out]   (columns: head0 | head1)

    Pass dtype=jnp.bfloat16 on v6e/v7x for the bf16 MXU path (loosen tolerances).
    """
    wn_t = w_neck.T
    wh_t = jnp.concatenate([w_head0, w_head1], axis=0).T
    if dtype is not None:
        wn_t = wn_t.astype(dtype)
        wh_t = wh_t.astype(dtype)
    return wn_t, wh_t


def two_head_student_forward(x, wn_t, wh_t, *, block_b=512):
    """Returns (xpost, xpre) exactly as TwoHeadStudent.forward(x, return_both_heads=True)
    with _switch == False (the module state right after __init__).

    wn_t / wh_t come from pack_two_head_weights() (called once, not per forward).
    """
    B, in_size = x.shape
    in_w, hid = wn_t.shape
    hid_w, two_out = wh_t.shape
    assert in_w == in_size and hid_w == hid and two_out % 2 == 0
    out = two_out // 2
    dt = x.dtype

    # --- batch tiling --------------------------------------------------------
    # Large tiles amortize the ~0.35us/step grid overhead.  For small B collapse
    # to a single full-batch block (block_shape == full dims, so no (8,128)
    # divisibility constraint).  For large B use a multiple-of-8 tile and pad.
    if B <= block_b:
        tb = B
    else:
        tb = max(8, (block_b // 8) * 8)
    b_pad = pl.cdiv(B, tb) * tb
    grid = (b_pad // tb,)
    # NOTE(v7x): for very large B keep grid >= 2 so both TensorCores get work.

    x_in = x if b_pad == B else jnp.pad(x, ((0, b_pad - B), (0, 0)))

    # --- explicit VMEM budget (v7x 64 MiB safe) ------------------------------
    est = (2 * tb * in_size * dt.itemsize                         # x tiles, double-buffered
           + 2 * 2 * tb * out * dt.itemsize                       # two outputs, double-buffered
           + (in_size * hid + hid * two_out) * wn_t.dtype.itemsize  # weights, single-buffered
           + 2 * tb * hid * 4)                                    # f32 h / erf intermediates
    vmem_limit = int(min(max(4 * est, 16 * 1024 * 1024), 56 * 1024 * 1024))

    cost = pl.CostEstimate(
        flops=2 * b_pad * in_size * hid + 2 * b_pad * hid * two_out,
        transcendentals=b_pad * hid,
        bytes_accessed=(x_in.size * dt.itemsize
                        + wn_t.size * wn_t.dtype.itemsize
                        + wh_t.size * wh_t.dtype.itemsize
                        + 2 * b_pad * out * dt.itemsize),
    )

    # Weights never change across the grid -> single-buffer them (halves weight VMEM).
    resident = pl.Buffered(buffer_count=1)

    xpost, xpre = pl.pallas_call(
        _two_head_student_kernel,
        out_shape=(jax.ShapeDtypeStruct((b_pad, out), dt),
                   jax.ShapeDtypeStruct((b_pad, out), dt)),
        grid=grid,
        in_specs=[
            pl.BlockSpec((tb, in_size), lambda i: (i, 0)),               # x: tiled over batch
            pl.BlockSpec((in_size, hid), lambda i: (0, 0),
                         pipeline_mode=resident),                        # W_neck^T: resident
            pl.BlockSpec((hid, two_out), lambda i: (0, 0),
                         pipeline_mode=resident),                        # fused heads^T: resident
        ],
        out_specs=(
            pl.BlockSpec((tb, out), lambda i: (i, 0)),                   # xpost (heads[0])
            pl.BlockSpec((tb, out), lambda i: (i, 0)),                   # xpre  (heads[1])
        ),
        compiler_params=pltpu.CompilerParams(
            dimension_semantics=("parallel",),   # batch tiles independent -> megacore on v7x
            vmem_limit_bytes=vmem_limit,
        ),
        cost_estimate=cost,
    )(x_in, wn_t, wh_t)

    if b_pad != B:
        xpost, xpre = xpost[:B], xpre[:B]
    return xpost, xpre


def reference_forward(x, w_neck, w_head0, w_head1):
    h = jax.lax.erf((x @ w_neck.T) * INV_SQRT2)
    return h @ w_head0.T, h @ w_head1.T


if __name__ == "__main__":
    # Small shapes consistent with the module: Linear(in, hid) -> ScaledERF -> Linear(hid, out)
    in_size, hid_size, out_size = 16, 32, 4
    batch = 64

    key = jax.random.PRNGKey(0)
    kx, kn, k0, k1 = jax.random.split(key, 4)

    x = jax.random.normal(kx, (batch, in_size), dtype=jnp.float32)
    # reset_parameters(): normal(mean=0, std=0.001) for all weights, bias=False everywhere.
    w_neck = 0.001 * jax.random.normal(kn, (hid_size, in_size), dtype=jnp.float32)
    w_head0 = 0.001 * jax.random.normal(k0, (out_size, hid_size), dtype=jnp.float32)
    w_head1 = 0.001 * jax.random.normal(k1, (out_size, hid_size), dtype=jnp.float32)

    # Pack once at parameter-build time (f32 here to keep tight tolerances; use
    # dtype=jnp.bfloat16 on v6e/v7x production shapes and loosen the asserts).
    wn_t, wh_t = pack_two_head_weights(w_neck, w_head0, w_head1)

    xpost, xpre = two_head_student_forward(x, wn_t, wh_t)
    jax.block_until_ready((xpost, xpre))

    ref_post, ref_pre = reference_forward(x, w_neck, w_head0, w_head1)
    assert xpost.shape == ref_post.shape and xpre.shape == ref_pre.shape
    assert jnp.allclose(xpost, ref_post, atol=1e-6, rtol=1e-5)
    assert jnp.allclose(xpre, ref_pre, atol=1e-6, rtol=1e-5)

    print("KERNEL_OK")
</pallas_src>

<mosaic_0001>
module attributes {stable_mosaic.version = 11 : i64} {
  func.func @_two_head_student_kernel(%arg0: i32, %arg1: memref<64x16xf32, #tpu.memory_space<vmem>>, %arg2: memref<16x32xf32, #tpu.memory_space<vmem>>, %arg3: memref<32x8xf32, #tpu.memory_space<vmem>>, %arg4: memref<64x4xf32, #tpu.memory_space<vmem>>, %arg5: memref<64x4xf32, #tpu.memory_space<vmem>>) attributes {dimension_semantics = [#tpu.dimension_semantics<parallel>], iteration_bounds = array<i64: 1>, scalar_prefetch = 0 : i64, scratch_operands = 0 : i64, tpu.core_type = #tpu.core_type<tc>, window_params = [{transform_indices = @transform_0, window_bounds = array<i64: 64, 16>}, {pipeline_mode = #tpu.pipeline_mode<synchronous>, transform_indices = @transform_1, window_bounds = array<i64: 16, 32>}, {pipeline_mode = #tpu.pipeline_mode<synchronous>, transform_indices = @transform_2, window_bounds = array<i64: 32, 8>}, {transform_indices = @transform_3, window_bounds = array<i64: 64, 4>}, {transform_indices = @transform_4, window_bounds = array<i64: 64, 4>}]} {
    %c0 = arith.constant 0 : index
    %c0_0 = arith.constant 0 : index
    %0 = vector.load %arg1[%c0, %c0_0] : memref<64x16xf32, #tpu.memory_space<vmem>>, vector<64x16xf32>
    %c0_1 = arith.constant 0 : index
    %c0_2 = arith.constant 0 : index
    %1 = vector.load %arg2[%c0_1, %c0_2] : memref<16x32xf32, #tpu.memory_space<vmem>>, vector<16x32xf32>
    %cst = arith.constant dense<0.000000e+00> : vector<64x32xf32>
    %2 = tpu.matmul %0, %1, %cst {dimension_numbers = #tpu.dot_dimension_numbers<[1], [0], [0], [1], [0, 0, 1, 1], [], []>} : vector<64x16xf32>, vector<16x32xf32>, vector<64x32xf32> -> vector<64x32xf32>
    %cst_3 = arith.constant 0.707106769 : f32
    %3 = vector.broadcast %cst_3 : f32 to vector<64x32xf32>
    %4 = arith.mulf %2, %3 : vector<64x32xf32>
    %5 = math.erf %4 : vector<64x32xf32>
    %c0_4 = arith.constant 0 : index
    %c0_5 = arith.constant 0 : index
    %6 = vector.load %arg3[%c0_4, %c0_5] : memref<32x8xf32, #tpu.memory_space<vmem>>, vector<32x8xf32>
    %cst_6 = arith.constant dense<0.000000e+00> : vector<64x8xf32>
    %7 = tpu.matmul %5, %6, %cst_6 {dimension_numbers = #tpu.dot_dimension_numbers<[1], [0], [0], [1], [0, 0, 1, 1], [], []>} : vector<64x32xf32>, vector<32x8xf32>, vector<64x8xf32> -> vector<64x8xf32>
    %8 = vector.extract_strided_slice %7 {offsets = [0, 0], sizes = [64, 4], strides = [1, 1]} : vector<64x8xf32> to vector<64x4xf32>
    %c0_7 = arith.constant 0 : index
    %c0_8 = arith.constant 0 : index
    %9 = vector.load %arg4[%c0_7, %c0_8] : memref<64x4xf32, #tpu.memory_space<vmem>>, vector<64x4xf32>
    tpu.vector_store %arg4[%c0_7, %c0_8], %8 {strides = array<i32>} : memref<64x4xf32, #tpu.memory_space<vmem>>, vector<64x4xf32>,
    %10 = vector.extract_strided_slice %7 {offsets = [0, 4], sizes = [64, 4], strides = [1, 1]} : vector<64x8xf32> to vector<64x4xf32>
    %c0_9 = arith.constant 0 : index
    %c0_10 = arith.constant 0 : index
    %11 = vector.load %arg5[%c0_9, %c0_10] : memref<64x4xf32, #tpu.memory_space<vmem>>, vector<64x4xf32>
    tpu.vector_store %arg5[%c0_9, %c0_10], %10 {strides = array<i32>} : memref<64x4xf32, #tpu.memory_space<vmem>>, vector<64x4xf32>,
    return
  }
  func.func @transform_0(%arg0: i32) -> (i32, i32) {
    %c0_i32 = arith.constant 0 : i32
    %c0_i32_0 = arith.constant 0 : i32
    return %arg0, %c0_i32 : i32, i32
  }
  func.func @transform_1(%arg0: i32) -> (i32, i32) {
    %c0_i32 = arith.constant 0 : i32
    %c0_i32_0 = arith.constant 0 : i32
    %c0_i32_1 = arith.constant 0 : i32
    return %c0_i32, %c0_i32_0 : i32, i32
  }
  func.func @transform_2(%arg0: i32) -> (i32, i32) {
    %c0_i32 = arith.constant 0 : i32
    %c0_i32_0 = arith.constant 0 : i32
    %c0_i32_1 = arith.constant 0 : i32
    return %c0_i32, %c0_i32_0 : i32, i32
  }
  func.func @transform_3(%arg0: i32) -> (i32, i32) {
    %c0_i32 = arith.constant 0 : i32
    %c0_i32_0 = arith.constant 0 : i32
    return %arg0, %c0_i32 : i32, i32
  }
  func.func @transform_4(%arg0: i32) -> (i32, i32) {
    %c0_i32 = arith.constant 0 : i32
    %c0_i32_0 = arith.constant 0 : i32
    return %arg0, %c0_i32 : i32, i32
  }
}

</mosaic_0001>

<bundles_post_ra>
// kernel: tpu_custom_call.1
= control target key start
LH: loop header
LB: loop body
LE: loop exit
PB: predicated region body
PF: predicated region fallthrough
CT: control target
= control target key end

     0   :  { %vm26_vm0 = vcmask 130048   ;;  %vm176_vm1 = vcmask 261120   ;;  %vm306_vm2 = vcmask 31744   ;;  %s466_s16 = smov 124   ;;  %s614_s1 = inlined_call_operand.vmem [shape: f32[16,32], index: 1, kind: input, shape index: {}]   ;;  %s615_s0 = inlined_call_operand.vmem [shape: f32[64,16], index: 0, kind: input, shape index: {}]   ;;  %s616_s2 = inlined_call_operand.vmem [shape: f32[32,8], index: 2, kind: input, shape index: {}]   ;;  %s617_s3 = inlined_call_operand.vmem [shape: f32[64,4], index: 3, kind: output, shape index: {0}]   ;;  %s618_s4 = inlined_call_operand.vmem [shape: f32[64,4], index: 4, kind: output, shape index: {1}]  }
   0x1   :  { %v24_v0 = vld [vmem:[%s614_s1] sm:$0xff]  ;;  %v25_v1 = vld [vmem:[%s614_s1 + $0x8] sm:$0xff]  ;;  %v18_v5 = vld [vmem:[%s615_s0 + $0x10] sm:$0xff] }
   0x2   :  { %v16_v2 = vld [vmem:[%s615_s0] sm:$0xff]  ;;  %v437_v3 = vpack.c.bf16 %v25_v1, %v24_v0  ;;  %v17_v4 = vld [vmem:[%s615_s0 + $0x8] sm:$0xff]  ;;  %v19_v6 = vld [vmem:[%s615_s0 + $0x18] sm:$0xff] }
   0x3   :  { %405 = vmatprep.mubr.msk.f32.mxu0 %vm26_vm0, %v16_v2  ;;  %v20_v7 = vld [vmem:[%s615_s0 + $0x20] sm:$0xff]  ;;  %v21_v8 = vld [vmem:[%s615_s0 + $0x28] sm:$0xff]  ;;  %v22_v9 = vld [vmem:[%s615_s0 + $0x30] sm:$0xff] }
   0x4   :  { %438 = vmatprep.subr.bf16.mxu0 %v437_v3  ;;  %v23_v10 = vld [vmem:[%s615_s0 + $0x38] sm:$0xff]  ;;  %v172_v11 = vld [vmem:[%s616_s2] sm:$0xff]  ;;  %v173_v12 = vld [vmem:[%s616_s2 + $0x8] sm:$0xff] }
   0x5   :  { %440 = vmatpush3.bf16.msra.mxu0 %v437_v3  ;;  %v441_v13 = vpack.c.bf16 %v173_v12, %v172_v11  ;;  %v174_v14 = vld [vmem:[%s616_s2 + $0x10] sm:$0xff]  ;;  %v175_v15 = vld [vmem:[%s616_s2 + $0x18] sm:$0xff] }
   0x6   :  { %v445_v16 = vpack.c.bf16 %v175_v15, %v174_v14 }
   0x7   :  { %442 = vmatprep.subr.bf16.mxu1 %v441_v13 }
   0x8   :  { %406 = vmatmul.mubr.msk.f32.vlgmr.msra.gmra.mrb[0].mxu0 %vm26_vm0, %v17_v4  ;;  %444 = vmatpush3.bf16.msra.mxu1 %v441_v13 }
   0x9   :  { %408 = vmatprep.mubr.msk.f32.mxu0 %vm26_vm0, %v18_v5  ;;  %446 = vmatprep.subr.bf16.mxu1 %v445_v16 }
   0xc   :  { %409 = vmatmul.mubr.msk.f32.gmra.mrb[2].mxu0 %vm26_vm0, %v19_v6  ;;  %448 = vmatpush3.bf16.msra.mxu1 %v445_v16 }
   0xd   :  { %411 = vmatprep.mubr.msk.f32.mxu0 %vm26_vm0, %v20_v7 }
  0x10   :  { %412 = vmatmul.mubr.msk.f32.gmra.mrb[4].mxu0 %vm26_vm0, %v21_v8 }
  0x11   :  { %414 = vmatprep.mubr.msk.f32.mxu0 %vm26_vm0, %v22_v9 }
  0x14   :  { %415 = vmatmul.mubr.msk.f32.gmra.mrb[6].mxu0 %vm26_vm0, %v23_v10 }
  0xdb   :  { %v407_v17 = vpop.f32.mrb[0].mxu0 }
  0xdc   :  { %v157_v18 = vmul.f32 0.70710677, %v407_v17  ;;  %v117_v19 = vpop.f32.mrb[1].mxu0 }
  0xdd   :  { %v156_v20 = vmul.f32 0.70710677, %v117_v19 }
  0xdf   :  { %450 = verf.f32 %v156_v20  ;;  %v410_v21 = vpop.f32.mrb[2].mxu0 }
  0xe0   :  { %452 = verf.f32 %v157_v18  ;;  %v159_v22 = vmul.f32 0.70710677, %v410_v21  ;;  %v127_v23 = vpop.f32.mrb[3].mxu0 }
  0xe1   :  { %v158_v24 = vmul.f32 0.70710677, %v127_v23 }
  0xe3   :  { %454 = verf.f32 %v158_v24  ;;  %v413_v25 = vpop.f32.mrb[4].mxu0 }
  0xe4   :  { %456 = verf.f32 %v159_v22  ;;  %v161_v26 = vmul.f32 0.70710677, %v413_v25  ;;  %v137_v27 = vpop.f32.mrb[5].mxu0 }
  0xe5   :  { %v160_v28 = vmul.f32 0.70710677, %v137_v27 }
  0xe6   :  { %458 = verf.f32 %v161_v26 }
  0xe7   :  { %460 = verf.f32 %v160_v28  ;;  %v416_v29 = vpop.f32.mrb[6].mxu0 }
  0xe8   :  { %v163_v30 = vmul.f32 0.70710677, %v416_v29  ;;  %v147_v31 = vpop.f32.mrb[7].mxu0 }
  0xe9   :  { %v451_v32 = vpop.eup %450  ;;  %v162_v33 = vmul.f32 0.70710677, %v147_v31 }
  0xea   :  { %v453_v34 = vpop.eup %452  ;;  %462 = verf.f32 %v163_v30  ;;  %425 = vmatprep.mubr.msk.f32.mxu1 %vm176_vm1, %v451_v32 }
  0xeb   :  { %464 = verf.f32 %v162_v33  ;;  %426 = vmatmul.mubr.msk.f32.vlgmr.msra.gmra.mrb[0].mxu1 %vm176_vm1, %v453_v34 }
  0xed   :  { %v455_v35 = vpop.eup %454 }
  0xee   :  { %v457_v36 = vpop.eup %456  ;;  %428 = vmatprep.mubr.msk.f32.mxu1 %vm176_vm1, %v455_v35 }
  0xef   :  { %429 = vmatmul.mubr.msk.f32.gmra.mrb[2].mxu1 %vm176_vm1, %v457_v36 }
  0xf0   :  { %v459_v37 = vpop.eup %458 }
  0xf1   :  { %v461_v38 = vpop.eup %460 }
  0xf2   :  { %431 = vmatprep.mubr.msk.f32.mxu1 %vm176_vm1, %v461_v38 }
  0xf3   :  { %432 = vmatmul.mubr.msk.f32.gmra.mrb[4].mxu1 %vm176_vm1, %v459_v37 }
  0xf4   :  { %v463_v39 = vpop.eup %462 }
  0xf5   :  { %v465_v40 = vpop.eup %464 }
  0xf6   :  { %434 = vmatprep.mubr.msk.f32.mxu1 %vm176_vm1, %v465_v40 }
  0xf7   :  { %435 = vmatmul.mubr.msk.f32.gmra.mrb[6].mxu1 %vm176_vm1, %v463_v39 }
 0x1be   :  { %v427_v41 = vpop.f32.mrb[0].mxu1 }
 0x1bf   :  { %308 = vst.msk [vmem:[%s617_s3 + $0x8] sm:$0xff] %vm306_vm2, %v427_v41  ;;  %325 = vrot.lane.b32.xlu0 %v427_v41, %s466_s16  ;;  %v267_v42 = vpop.f32.mrb[1].mxu1 }
 0x1c0   :  { %307 = vst.msk [vmem:[%s617_s3] sm:$0xff] %vm306_vm2, %v267_v42 }
 0x1c2   :  { %v430_v43 = vpop.f32.mrb[2].mxu1 }
 0x1c3   :  { %310 = vst.msk [vmem:[%s617_s3 + $0x18] sm:$0xff] %vm306_vm2, %v430_v43  ;;  %323 = vrot.lane.b32.xlu0 %v267_v42, %s466_s16  ;;  %329 = vrot.lane.b32.xlu1 %v430_v43, %s466_s16  ;;  %v277_v44 = vpop.f32.mrb[3].mxu1 }
 0x1c4   :  { %309 = vst.msk [vmem:[%s617_s3 + $0x10] sm:$0xff] %vm306_vm2, %v277_v44 }
 0x1c6   :  { %v433_v45 = vpop.f32.mrb[4].mxu1 }
 0x1c7   :  { %312 = vst.msk [vmem:[%s617_s3 + $0x28] sm:$0xff] %vm306_vm2, %v433_v45  ;;  %327 = vrot.lane.b32.xlu1 %v277_v44, %s466_s16  ;;  %v287_v46 = vpop.f32.mrb[5].mxu1 }
 0x1c8   :  { %311 = vst.msk [vmem:[%s617_s3 + $0x20] sm:$0xff] %vm306_vm2, %v287_v46  ;;  %331 = vrot.lane.b32.xlu0 %v287_v46, %s466_s16 }
 0x1ca   :  { %v436_v47 = vpop.f32.mrb[6].mxu1 }
 0x1cb   :  { %314 = vst.msk [vmem:[%s617_s3 + $0x38] sm:$0xff] %vm306_vm2, %v436_v47  ;;  %333 = vrot.lane.b32.xlu1 %v433_v45, %s466_s16  ;;  %v297_v48 = vpop.f32.mrb[7].mxu1 }
 0x1cc   :  { %313 = vst.msk [vmem:[%s617_s3 + $0x30] sm:$0xff] %vm306_vm2, %v297_v48  ;;  %335 = vrot.lane.b32.xlu0 %v297_v48, %s466_s16 }
 0x1cf   :  { %337 = vrot.lane.b32.xlu1 %v436_v47, %s466_s16 }
 0x231   :  { %v326_v49 = vpop.permute.xlu0 %325 }
 0x232   :  { %348 = vst.msk [vmem:[%s618_s4 + $0x8] sm:$0xff] %vm306_vm2, %v326_v49 }
 0x235   :  { %v324_v50 = vpop.permute.xlu0 %323  ;;  %v330_v51 = vpop.permute.xlu1 %329 }
 0x236   :  { %347 = vst.msk [vmem:[%s618_s4] sm:$0xff] %vm306_vm2, %v324_v50  ;;  %350 = vst.msk [vmem:[%s618_s4 + $0x18] sm:$0xff] %vm306_vm2, %v330_v51 }
 0x239   :  { %v328_v52 = vpop.permute.xlu1 %327 }
 0x23a   :  { %349 = vst.msk [vmem:[%s618_s4 + $0x10] sm:$0xff] %vm306_vm2, %v328_v52  ;;  %v332_v53 = vpop.permute.xlu0 %331 }
 0x23b   :  { %351 = vst.msk [vmem:[%s618_s4 + $0x20] sm:$0xff] %vm306_vm2, %v332_v53 }
 0x23d   :  { %v334_v54 = vpop.permute.xlu1 %333 }
 0x23e   :  { %352 = vst.msk [vmem:[%s618_s4 + $0x28] sm:$0xff] %vm306_vm2, %v334_v54  ;;  %v336_v55 = vpop.permute.xlu0 %335 }
 0x23f   :  { %353 = vst.msk [vmem:[%s618_s4 + $0x30] sm:$0xff] %vm306_vm2, %v336_v55 }
 0x241   :  { %v338_v56 = vpop.permute.xlu1 %337 }
 0x242   :  { %354 = vst.msk [vmem:[%s618_s4 + $0x38] sm:$0xff] %vm306_vm2, %v338_v56 }

</bundles_post_ra>
